<compile_context>
chip_gen: v5e
topology: v5e:2x2
jax: 0.10.0
libtpu: 0.0.40
codegen_flags: <defaults>
</compile_context>

<pallas_src>
import functools

import jax
import jax.numpy as jnp
from jax import lax
from jax.experimental import pallas as pl
from jax.experimental.pallas import tpu as pltpu


# ---------------------------------------------------------------------------
# Generation-aware sizing.
# ---------------------------------------------------------------------------
def _query_vmem_capacity_bytes() -> int:
    """Physical per-core VMEM (128 MiB v5e/v6e, 64 MiB v7x); conservative fallback."""
    try:
        cap = int(pltpu.get_tpu_info().vmem_capacity_bytes)
        if cap > 0:
            return cap
    except Exception:
        pass
    return 64 * 1024 * 1024


def _query_num_tensorcores_per_device() -> int:
    """2 TensorCores per chip on v7x, 1 on v5e/v6e (detection is best-effort)."""
    try:
        kind = jax.devices()[0].device_kind.lower()
        if "v7" in kind or "7x" in kind:
            return 2
    except Exception:
        pass
    return 1


_VMEM_CAP = _query_vmem_capacity_bytes()
_VMEM_LIMIT_BYTES = (_VMEM_CAP * 3) // 4      # ~96 MiB on v5e/v6e, ~48 MiB on v7x
_VMEM_BLOCK_BUDGET = (_VMEM_CAP * 9) // 16    # ~72 MiB on v5e/v6e, ~36 MiB on v7x
_PER_BLOCK_CAP_BYTES = 4 * 1024 * 1024        # >=512-lane tiles hit ~85% of roofline
_VMEM_SLACK_BYTES = 2 * 1024 * 1024
_NUM_TENSORCORES = _query_num_tensorcores_per_device()
_MAX_UNROLLED_CHUNKS = 32                     # static-unroll limit for chunked pooling


def _compiler_params(semantics, *block_bytes):
    """CompilerParams whose vmem limit always covers the (double-buffered) blocks
    actually requested, clamped below physical VMEM."""
    needed = 2 * sum(block_bytes) + _VMEM_SLACK_BYTES
    limit = max(_VMEM_LIMIT_BYTES, needed)
    limit = min(limit, max(_VMEM_CAP - 4 * 1024 * 1024, _VMEM_LIMIT_BYTES))
    return pltpu.CompilerParams(dimension_semantics=semantics,
                                vmem_limit_bytes=int(limit))


def _largest_tile(dim: int, unit: int, max_elems: int) -> int:
    """Largest divisor of `dim` that is a multiple of `unit` and <= max_elems.

    Falls back to the full dim when `dim` is not a multiple of `unit`
    (TPU (8,128) rule: block dims must be divisible by the tile unit or equal
    the full array dim)."""
    if dim % unit != 0:
        return dim
    cap = max(unit, (min(max_elems, dim) // unit) * unit)
    t = cap
    while dim % t != 0:
        t -= unit
    return t


# ---------------------------------------------------------------------------
# In-kernel helper: lane-chunked f32 partial sums (VPU adds, no per-chunk XLU).
# ---------------------------------------------------------------------------
def _lane_chunk_partial_sum(x_ref, init, n_chunks):
    """Add `n_chunks` lane-aligned (.., 128) slices of x_ref to `init` (f32).

    Keeps the bulk accumulation on the 4-slot VPU; the single cross-lane XLU
    reduce is done by the caller once at the very end."""
    def add_chunk(n, partial):
        off = n * 128
        if not isinstance(off, int):
            off = pl.multiple_of(off, 128)
        return partial + x_ref[:, :, pl.ds(off, 128)].astype(jnp.float32)

    if n_chunks <= _MAX_UNROLLED_CHUNKS:
        out = init
        for n in range(n_chunks):
            out = add_chunk(n, out)
        return out
    return lax.fori_loop(0, n_chunks, add_chunk, init, unroll=8)


# ---------------------------------------------------------------------------
# Path A: single-pass kernel (one batch element per grid step).
# ---------------------------------------------------------------------------
def _eca_fused_kernel(w_ref, x_ref, o_ref, *, k_size: int, inv_hw: float,
                      n_lane_chunks: int):
    """Pool -> 1D channel conv -> sigmoid -> scale, for one batch element.

    w_ref : SMEM (k_size,) f32    conv1d weight (no bias)
    x_ref : VMEM (1, C, HW)       input tile
    o_ref : VMEM (1, C, HW)       output tile
    """
    c = x_ref.shape[1]
    pad = (k_size - 1) // 2

    # Global average pool over the spatial (lane) axis; accumulate in f32.
    if n_lane_chunks > 0:
        partial = _lane_chunk_partial_sum(
            x_ref, jnp.zeros((1, c, 128), jnp.float32), n_lane_chunks)
        y = jnp.sum(partial, axis=-1) * inv_hw                       # (1, C), one XLU reduce
    else:
        y = jnp.sum(x_ref[...].astype(jnp.float32), axis=-1) * inv_hw

    # k-tap 1D convolution along the channel axis with zero padding (matches
    # PyTorch Conv1d cross-correlation).  Tiny, off the hot path.
    if pad > 0:
        zeros = jnp.zeros((1, pad), dtype=y.dtype)
        y_pad = jnp.concatenate([zeros, y, zeros], axis=-1)          # (1, C+2p)
    else:
        y_pad = y
    attn = jnp.zeros_like(y)
    for j in range(k_size):                                          # static, tiny
        attn = attn + w_ref[j] * y_pad[:, j:j + c]
    attn = jax.nn.sigmoid(attn).astype(o_ref.dtype)                  # (1, C), native dtype

    # Scale in the native input dtype (bf16 stays bf16 on v6e/v7x; Mosaic
    # inserts the f32 conversions automatically on v5e).  Re-reading x_ref
    # keeps the full tile's vreg live range short.
    o_ref[...] = x_ref[...] * attn[:, :, None]


def _eca_fused(x_flat: jax.Array, weight: jax.Array, k_size: int) -> jax.Array:
    b, c, hw = x_flat.shape
    itemsize = jnp.dtype(x_flat.dtype).itemsize
    n_chunks = hw // 128 if hw % 128 == 0 else 0
    kernel = functools.partial(_eca_fused_kernel, k_size=k_size,
                               inv_hw=1.0 / hw, n_lane_chunks=n_chunks)
    blk = c * hw * itemsize
    return pl.pallas_call(
        kernel,
        out_shape=jax.ShapeDtypeStruct((b, c, hw), x_flat.dtype),
        grid_spec=pltpu.PrefetchScalarGridSpec(
            num_scalar_prefetch=0,
            grid=(b,),
            in_specs=[
                pl.BlockSpec(memory_space=pltpu.MemorySpace.SMEM),   # conv weight
                pl.BlockSpec((1, c, hw), lambda i: (i, 0, 0)),       # x tile
            ],
            out_specs=pl.BlockSpec((1, c, hw), lambda i: (i, 0, 0)),
        ),
        compiler_params=_compiler_params(("parallel",), blk, blk),
    )(weight, x_flat)


# ---------------------------------------------------------------------------
# Path B: two-phase fallback (pool kernel -> JAX conv/sigmoid -> scale kernel).
# ---------------------------------------------------------------------------
def _eca_pool_kernel(x_ref, psum_ref, acc_ref, *, n_lane_chunks: int):
    """Accumulate per-channel spatial sums across the (innermost) HW-tile axis.

    x_ref    : VMEM (1, C, hw_tile)       input tile
    psum_ref : VMEM (1, 1, 1, C) f32      partial sum for this (batch, split) cell
    acc_ref  : VMEM (1, C, 128) or (1, C) f32 running-sum scratch
    """
    t = pl.program_id(2)

    @pl.when(t == 0)
    def _():
        acc_ref[...] = jnp.zeros_like(acc_ref)

    if n_lane_chunks > 0:
        acc_ref[...] = _lane_chunk_partial_sum(x_ref, acc_ref[...], n_lane_chunks)
    else:
        acc_ref[...] += jnp.sum(x_ref[...].astype(jnp.float32), axis=-1)

    @pl.when(t == pl.num_programs(2) - 1)
    def _():
        if n_lane_chunks > 0:
            s = jnp.sum(acc_ref[...], axis=-1)        # (1, C), single XLU reduce per cell
        else:
            s = acc_ref[...]                          # (1, C)
        psum_ref[...] = s[:, None, None, :]


def _eca_scale_kernel(attn_ref, x_ref, o_ref):
    """o = x * attn (attention broadcast over the spatial/lane axis).

    attn_ref : VMEM (1, c_tile, 1)        in x.dtype (native-dtype multiply)
    x_ref    : VMEM (1, c_tile, hw_tile)
    o_ref    : VMEM (1, c_tile, hw_tile)
    """
    o_ref[...] = x_ref[...] * attn_ref[...]


def _channel_attention(pooled: jax.Array, weight: jax.Array, k_size: int) -> jax.Array:
    """k-tap channel conv + sigmoid on the tiny pooled (B, C) tensor (plain JAX)."""
    b, c = pooled.shape
    pad = (k_size - 1) // 2
    y_pad = jnp.pad(pooled.astype(jnp.float32), ((0, 0), (pad, pad)))
    w = weight.astype(jnp.float32)
    attn = sum(w[j] * y_pad[:, j:j + c] for j in range(k_size))
    return jax.nn.sigmoid(attn)                                      # (B, C) f32


def _choose_scale_tiles(c: int, hw: int, itemsize: int):
    """Pick (c_tile, hw_tile): lane-dense (multiple-of-128, >=512 preferred) HW
    tiles, full-C when possible, each block capped at ~_PER_BLOCK_CAP_BYTES."""
    max_elems = max(_PER_BLOCK_CAP_BYTES // itemsize, 512)
    if hw % 128 != 0:
        hw_tile = hw                                 # full dim required by tiling rule
    else:
        hw_tile = _largest_tile(hw, 128, max(max_elems // c, 512))
    if c % 8 != 0 or c * hw_tile <= max_elems:
        c_tile = c
    else:
        c_tile = _largest_tile(c, 8, max(max_elems // hw_tile, 8))
    return c_tile, hw_tile


def _eca_two_phase(x_flat: jax.Array, weight: jax.Array, k_size: int) -> jax.Array:
    b, c, hw = x_flat.shape
    itemsize = jnp.dtype(x_flat.dtype).itemsize

    # Exotic-shape safety: if HW is not 128-aligned we would otherwise need a
    # full-HW block; when that block would not fit the budget, zero-pad HW to a
    # multiple of 128 (zeros do not perturb the sum; pad is sliced off at end).
    pad_hw = 0
    if hw % 128 != 0 and 4 * c * hw * itemsize > _VMEM_BLOCK_BUDGET:
        pad_hw = (-hw) % 128
        x_work = jnp.pad(x_flat, ((0, 0), (0, 0), (0, pad_hw)))
    else:
        x_work = x_flat
    hw_work = hw + pad_hw

    # Phase 1: per-channel spatial sums, HW tiled ("arbitrary" reduction axis last).
    if hw_work % 128 != 0:
        pool_hw_tile = hw_work
    else:
        cap = max(_PER_BLOCK_CAP_BYTES // (itemsize * c), 512)
        pool_hw_tile = _largest_tile(hw_work, 128, cap)
    pool_chunks = pool_hw_tile // 128 if pool_hw_tile % 128 == 0 else 0
    n_hw_tiles = hw_work // pool_hw_tile
    # Parallel HW split so both v7x TensorCores help with the pool at tiny batch.
    n_par = 2 if (b < _NUM_TENSORCORES and n_hw_tiles >= 2 and n_hw_tiles % 2 == 0) else 1
    tiles_per_par = n_hw_tiles // n_par
    acc_shape = (1, c, 128) if pool_chunks > 0 else (1, c)

    pool_kernel = functools.partial(_eca_pool_kernel, n_lane_chunks=pool_chunks)
    psums = pl.pallas_call(
        pool_kernel,
        out_shape=jax.ShapeDtypeStruct((b, n_par, 1, c), jnp.float32),
        grid_spec=pltpu.PrefetchScalarGridSpec(
            num_scalar_prefetch=0,
            grid=(b, n_par, tiles_per_par),
            in_specs=[pl.BlockSpec(
                (1, c, pool_hw_tile),
                lambda i, p, t: (i, 0, p * tiles_per_par + t))],
            out_specs=pl.BlockSpec((1, 1, 1, c), lambda i, p, t: (i, p, 0, 0)),
            scratch_shapes=[pltpu.VMEM(acc_shape, jnp.float32)],
        ),
        compiler_params=_compiler_params(
            ("parallel", "parallel", "arbitrary"),
            c * pool_hw_tile * itemsize, c * 4),
    )(x_work)

    # Phase 2: tiny conv + sigmoid hoisted out of the hot kernels entirely.
    pooled = jnp.sum(psums.reshape(b, n_par, c), axis=1) * (1.0 / hw)   # true HW mean
    attn = _channel_attention(pooled, weight, k_size)                   # (B, C) f32
    attn = attn.astype(x_flat.dtype).reshape(b, c, 1)                   # native-dtype multiply

    # Phase 3: fully parallel scale kernel (feeds both v7x TensorCores).
    c_tile, hw_tile = _choose_scale_tiles(c, hw_work, itemsize)
    out = pl.pallas_call(
        _eca_scale_kernel,
        out_shape=jax.ShapeDtypeStruct((b, c, hw_work), x_work.dtype),
        grid_spec=pltpu.PrefetchScalarGridSpec(
            num_scalar_prefetch=0,
            grid=(b, c // c_tile, hw_work // hw_tile),
            in_specs=[
                pl.BlockSpec((1, c_tile, 1), lambda i, ci, ti: (i, ci, 0)),
                pl.BlockSpec((1, c_tile, hw_tile), lambda i, ci, ti: (i, ci, ti)),
            ],
            out_specs=pl.BlockSpec((1, c_tile, hw_tile), lambda i, ci, ti: (i, ci, ti)),
        ),
        compiler_params=_compiler_params(
            ("parallel", "parallel", "parallel"),
            c_tile * itemsize, c_tile * hw_tile * itemsize, c_tile * hw_tile * itemsize),
    )(attn, x_work)
    return out[:, :, :hw] if pad_hw else out


# ---------------------------------------------------------------------------
# Public wrapper.
# ---------------------------------------------------------------------------
def eca_layer_pallas(x: jax.Array, weight: jax.Array, k_size: int = 3,
                     *, force_two_phase: bool = False) -> jax.Array:
    """ECA forward.  x: (B, C, H, W), weight: (k_size,) -> (B, C, H, W).

    The bulk tensor is read/written in x.dtype (pass bf16 for ~2x bandwidth);
    pooling accumulation and attention math are always f32.
    """
    # TODO(synk): for hot layers with tiny, non-128 H*W (7x7/14x14) and C a
    # multiple of 128, regrouping channels into the lane axis would lift lane
    # utilization; not implemented here (low priority per review).
    b, c, h, w = x.shape
    hw = h * w
    x_flat = x.reshape(b, c, hw)
    weight = weight.reshape(-1).astype(jnp.float32)
    itemsize = jnp.dtype(x.dtype).itemsize

    # Single-pass needs in+out (1, C, HW) blocks, each double-buffered.
    fused_block_bytes = 4 * c * hw * itemsize
    use_fused = (not force_two_phase) and fused_block_bytes <= _VMEM_BLOCK_BUDGET

    # v7x: 2 TensorCores per chip, each with its own HBM path.  With B below the
    # core count, grid=(B,) strands a core; prefer the fully parallel two-phase
    # path whenever it actually yields >= 2 scale blocks to spread.
    if use_fused and _NUM_TENSORCORES > 1 and b < _NUM_TENSORCORES:
        c_tile, hw_tile = _choose_scale_tiles(c, hw, itemsize)
        if b * (c // c_tile) * (hw // hw_tile) >= 2:
            use_fused = False

    if use_fused:
        out_flat = _eca_fused(x_flat, weight, k_size)
    else:
        out_flat = _eca_two_phase(x_flat, weight, k_size)
    return out_flat.reshape(b, c, h, w)


def _eca_reference(x, weight, k_size=3):
    """Pure-JAX reference mirroring the PyTorch forward (f32)."""
    y = jnp.mean(x.astype(jnp.float32), axis=(2, 3))                 # (B, C)
    pad = (k_size - 1) // 2
    y_pad = jnp.pad(y, ((0, 0), (pad, pad)))
    c = x.shape[1]
    attn = sum(weight[j] * y_pad[:, j:j + c] for j in range(k_size))
    attn = jax.nn.sigmoid(attn)
    return x.astype(jnp.float32) * attn[:, :, None, None]


if __name__ == "__main__":
    key = jax.random.PRNGKey(0)
    kx, kw, kx2 = jax.random.split(key, 3)

    B, C, H, W = 2, 4, 16, 16
    K_SIZE = 3

    x = jax.random.normal(kx, (B, C, H, W), dtype=jnp.float32)
    weight = (jax.random.uniform(kw, (K_SIZE,), dtype=jnp.float32,
                                 minval=-1.0, maxval=1.0)
              / jnp.sqrt(float(K_SIZE)))

    # Path A (single-pass) on the module's example shape.
    out = jax.block_until_ready(eca_layer_pallas(x, weight, k_size=K_SIZE))
    ref = _eca_reference(x, weight, k_size=K_SIZE)
    assert out.shape == (B, C, H, W)
    assert jnp.allclose(out, ref, atol=1e-5, rtol=1e-5)

    # Path B (two-phase fallback) on a non-128-aligned spatial map (7x7).
    B2, C2, H2, W2 = 2, 8, 7, 7
    x2 = jax.random.normal(kx2, (B2, C2, H2, W2), dtype=jnp.float32)
    out2 = jax.block_until_ready(
        eca_layer_pallas(x2, weight, k_size=K_SIZE, force_two_phase=True))
    ref2 = _eca_reference(x2, weight, k_size=K_SIZE)
    assert out2.shape == (B2, C2, H2, W2)
    assert jnp.allclose(out2, ref2, atol=1e-5, rtol=1e-5)

    # Path B on a 128-aligned spatial map (exercises chunked pool + tiled scale).
    B3, C3, H3, W3 = 2, 8, 16, 16
    x3 = jax.random.normal(kx2, (B3, C3, H3, W3), dtype=jnp.float32)
    out3 = jax.block_until_ready(
        eca_layer_pallas(x3, weight, k_size=K_SIZE, force_two_phase=True))
    ref3 = _eca_reference(x3, weight, k_size=K_SIZE)
    assert jnp.allclose(out3, ref3, atol=1e-5, rtol=1e-5)

    # bf16 storage path (bandwidth optimization): bulk data + scale multiply in
    # bf16, pooling/attention math still f32.
    xb = x.astype(jnp.bfloat16)
    outb = jax.block_until_ready(eca_layer_pallas(xb, weight, k_size=K_SIZE))
    refb = _eca_reference(xb, weight, k_size=K_SIZE)
    assert outb.dtype == jnp.bfloat16
    assert jnp.allclose(outb.astype(jnp.float32), refb, atol=2e-2, rtol=2e-2)

    print("KERNEL_OK")
</pallas_src>

<mosaic_0001>
module attributes {stable_mosaic.version = 11 : i64} {
  func.func @_eca_fused_kernel(%arg0: i32, %arg1: memref<3xf32, #tpu.memory_space<smem>>, %arg2: memref<1x4x256xf32, #tpu.memory_space<vmem>>, %arg3: memref<1x4x256xf32, #tpu.memory_space<vmem>>) attributes {dimension_semantics = [#tpu.dimension_semantics<parallel>], iteration_bounds = array<i64: 2>, scalar_prefetch = 0 : i64, scratch_operands = 0 : i64, tpu.core_type = #tpu.core_type<tc>, window_params = [{transform_indices = @transform_0, window_bounds = array<i64: 3>}, {transform_indices = @transform_1, window_bounds = array<i64: 1, 4, 256>}, {transform_indices = @transform_2, window_bounds = array<i64: 1, 4, 256>}]} {
    %cst = arith.constant 0.000000e+00 : f32
    %0 = vector.broadcast %cst : f32 to vector<1x4x128xf32>
    %c0 = arith.constant 0 : index
    %c0_0 = arith.constant 0 : index
    %c0_1 = arith.constant 0 : index
    %1 = vector.load %arg2[%c0, %c0_0, %c0_1] : memref<1x4x256xf32, #tpu.memory_space<vmem>>, vector<1x4x128xf32>
    %2 = arith.addf %0, %1 : vector<1x4x128xf32>
    %c0_2 = arith.constant 0 : index
    %c0_3 = arith.constant 0 : index
    %c128 = arith.constant 128 : index
    %3 = vector.load %arg2[%c0_2, %c0_3, %c128] : memref<1x4x256xf32, #tpu.memory_space<vmem>>, vector<1x4x128xf32>
    %4 = arith.addf %2, %3 : vector<1x4x128xf32>
    %cst_4 = arith.constant dense<0.000000e+00> : vector<1x4xf32>
    %5 = vector.multi_reduction <add>, %4, %cst_4 [2] : vector<1x4x128xf32> to vector<1x4xf32>
    %cst_5 = arith.constant 3.906250e-03 : f32
    %6 = vector.broadcast %cst_5 : f32 to vector<1x4xf32>
    %7 = arith.mulf %5, %6 : vector<1x4xf32>
    %cst_6 = arith.constant 0.000000e+00 : f32
    %8 = vector.broadcast %cst_6 : f32 to vector<1x1xf32>
    %9 = tpu.concatenate %8, %7, %8 in 1 : vector<1x1xf32>, vector<1x4xf32>, vector<1x1xf32> -> vector<1x6xf32>
    %cst_7 = arith.constant 0.000000e+00 : f32
    %10 = vector.broadcast %cst_7 : f32 to vector<1x4xf32>
    %c0_8 = arith.constant 0 : index
    %11 = memref.load %arg1[%c0_8] : memref<3xf32, #tpu.memory_space<smem>>
    %12 = vector.extract_strided_slice %9 {offsets = [0, 0], sizes = [1, 4], strides = [1, 1]} : vector<1x6xf32> to vector<1x4xf32>
    %13 = vector.broadcast %11 : f32 to vector<1x4xf32>
    %14 = arith.mulf %13, %12 : vector<1x4xf32>
    %15 = arith.addf %10, %14 : vector<1x4xf32>
    %c1 = arith.constant 1 : index
    %16 = memref.load %arg1[%c1] : memref<3xf32, #tpu.memory_space<smem>>
    %17 = vector.extract_strided_slice %9 {offsets = [0, 1], sizes = [1, 4], strides = [1, 1]} : vector<1x6xf32> to vector<1x4xf32>
    %18 = vector.broadcast %16 : f32 to vector<1x4xf32>
    %19 = arith.mulf %18, %17 : vector<1x4xf32>
    %20 = arith.addf %15, %19 : vector<1x4xf32>
    %c2 = arith.constant 2 : index
    %21 = memref.load %arg1[%c2] : memref<3xf32, #tpu.memory_space<smem>>
    %22 = vector.extract_strided_slice %9 {offsets = [0, 2], sizes = [1, 4], strides = [1, 1]} : vector<1x6xf32> to vector<1x4xf32>
    %23 = vector.broadcast %21 : f32 to vector<1x4xf32>
    %24 = arith.mulf %23, %22 : vector<1x4xf32>
    %25 = arith.addf %20, %24 : vector<1x4xf32>
    %26 = arith.negf %25 : vector<1x4xf32>
    %27 = math.exp %26 : vector<1x4xf32>
    %cst_9 = arith.constant 1.000000e+00 : f32
    %28 = vector.broadcast %cst_9 : f32 to vector<1x4xf32>
    %29 = arith.addf %28, %27 : vector<1x4xf32>
    %30 = arith.divf %28, %29 : vector<1x4xf32>
    %c0_10 = arith.constant 0 : index
    %c0_11 = arith.constant 0 : index
    %c0_12 = arith.constant 0 : index
    %31 = vector.load %arg2[%c0_10, %c0_11, %c0_12] : memref<1x4x256xf32, #tpu.memory_space<vmem>>, vector<1x4x256xf32>
    %32 = vector.shape_cast %30 : vector<1x4xf32> to vector<1x4x1xf32>
    %33 = vector.broadcast %32 : vector<1x4x1xf32> to vector<1x4x256xf32>
    %34 = arith.mulf %31, %33 : vector<1x4x256xf32>
    %c0_13 = arith.constant 0 : index
    %c0_14 = arith.constant 0 : index
    %c0_15 = arith.constant 0 : index
    %35 = vector.load %arg3[%c0_13, %c0_14, %c0_15] : memref<1x4x256xf32, #tpu.memory_space<vmem>>, vector<1x4x256xf32>
    tpu.vector_store %arg3[%c0_13, %c0_14, %c0_15], %34 {strides = array<i32>} : memref<1x4x256xf32, #tpu.memory_space<vmem>>, vector<1x4x256xf32>,
    return
  }
  func.func @transform_0(%arg0: i32) -> i32 {
    %c0_i32 = arith.constant 0 : i32
    %c0_i32_0 = arith.constant 0 : i32
    return %c0_i32 : i32
  }
  func.func @transform_1(%arg0: i32) -> (i32, i32, i32) {
    %c0_i32 = arith.constant 0 : i32
    %c0_i32_0 = arith.constant 0 : i32
    %c0_i32_1 = arith.constant 0 : i32
    return %arg0, %c0_i32, %c0_i32_0 : i32, i32, i32
  }
  func.func @transform_2(%arg0: i32) -> (i32, i32, i32) {
    %c0_i32 = arith.constant 0 : i32
    %c0_i32_0 = arith.constant 0 : i32
    %c0_i32_1 = arith.constant 0 : i32
    return %arg0, %c0_i32, %c0_i32_0 : i32, i32, i32
  }
}

</mosaic_0001>

<bundles_post_ra>
// kernel: tpu_custom_call.1
= control target key start
LH: loop header
LB: loop body
LE: loop exit
PB: predicated region body
PF: predicated region fallthrough
CT: control target
= control target key end

     0   :  { %7 = vsyncpa [#allocation5], 0  ;;  %s719_s0 = inlined_call_operand.hbm [shape: f32[3], index: 0, kind: input, shape index: {}]   ;;  %s720_s1 = inlined_call_operand.hbm [shape: f32[2,4,256], index: 1, kind: input, shape index: {}]   ;;  %s721_s2 = inlined_call_operand.hbm [shape: f32[2,4,256], index: 2, kind: output, shape index: {}]  }
   0x1   :  { %8 = vsyncpa [#allocation3], 0 }
   0x2   :  { %10 = vsyncpa [#allocation3 + $0x1], 0 }
   0x3   :  { %11 = vsyncpa [#allocation4], 0 }
   0x4   :  { %13 = vsyncpa [#allocation4 + $0x1], 0  ;;  %s572_s9 = smov 0   ;;  %s574_s10 = smov 0  }
   0x5   :  { %s576_s11 = smov 0   ;;  %s578_s12 = smov 0  }
   0x6 LB: > { %s593_s13 = sadd.s32 4294967295, %s551_s12   ;;  %s349_s14 = sadd.s32 4294967294, %s551_s12   ;;  %s551_s12 = sphi %s578_s12, %s731_s12   ;;  %s547_s11 = sphi %s576_s11, %s730_s11   ;;  %s543_s10 = sphi %s574_s10, %s729_s10   ;;  %s539_s9 = sphi %s572_s9, %s728_s9  }
   0x7   : > { %p60_p0 = scmp.ne.s32.totalorder %s543_s10, %s539_s9  ;;  %p61_p1 = scmp.eq.s32.totalorder %s593_s13, 0 }
   0x8   : > { %p84_p2 = scmp.eq.s32.totalorder %s593_s13, 1  ;;  %p90_p3 = scmp.eq.s32.totalorder %s349_s14, 1 }
   0x9   : > { %p602_p4 = por %p61_p1, %p60_p0  ;;  %p350_p5 = scmp.ge.s32.totalorder %s551_s12, 1 }
   0xa   : > { %p607_p6 = por %p90_p3, %p60_p0  ;;  %p97_p7 = scmp.lt.s32.totalorder %s551_s12, 3 }
   0xb   : > { %s109_s19 = sshll.u32 %s719_s0, 4  ;;  %s623_s21 = sadd.s32 1, %s551_s12   ;;  %s110_s19 = int_to_ptr.hbm [resolvable:$true] %s109_s19 }
   0xc   : > { %p615_p8 = pnand %p350_p5, %p97_p7  ;;  %s44_s22 = ssub.s32 %s551_s12, %s623_s21 }
   0xd   : > { %p45_p12 = scmp.eq.s32.totalorder %s44_s22, 0  ;;  %s47_s23 = sadd.s32 1, %s547_s11 }
   0xe   : > { %p378_p10 = pneg %p615_p8  ;;  %p54_p13 = scmp.ne.s32.totalorder %s547_s11, %s543_s10 }
   0xf   : > { %s553_s24 = smov [#allocation2]   ;;  %p55_p0 = scmp.eq.s32.totalorder %s551_s12, 0 }
  0x10   : > { %p379_p11 = pnand %p378_p10, %p61_p1  ;;  %p638_p3 = por %p84_p2, %p54_p13 }
  0x11   : > { %s633_s25 = scalar_select %p45_p12, %s547_s11, %s47_s23  }
  0x12   : > { %381 = dma.hbm_to_smem (!%p379_p11), %s110_s19, 16, %s553_s24, [#allocation5]  }
  0x13   : > { %s120_s27 = sand.u32 1, %s547_s11   ;;  %p56_p5 = por %p55_p0, %p54_p13 }
  0x14   : > { %p391_p7 = scmp.lt.s32.totalorder %s551_s12, 2  ;;  %s353_s28 = sshll.u32 %s120_s27, 3 }
  0x15   : > { %s368_s29 = sshll.u32 %s551_s12, 3  ;;  %s124_s6 = scalar_lea.vmem [#allocation6], %s353_s28 }
  0x16   : > { %s129_s4 = scalar_lea.hbm %s720_s1, %s368_s29  ;;  %s133_s7 = sshll.u32 %s124_s6, 4  ;;  %s134_s7 = int_to_ptr.vmem [resolvable:$true] %s133_s7 }
  0x17   : > { %s131_s5 = sshll.u32 %s129_s4, 4  ;;  %p648_p10 = pnand %p391_p7, %p56_p5  ;;  %s132_s5 = int_to_ptr.hbm [resolvable:$true] %s131_s5 }
  0x18   : > { %s121_s14 = scalar_lea.sflag [#allocation3], %s120_s27  ;;  %s451_s17 = sshra.s32 %s132_s5, 4  ;;  %s452_s17 = int_to_ptr.hbm [resolvable:$true] %s451_s17 }
  0x19   : > { %s453_s18 = scalar_lea.hbm %s452_s17, 8  ;;  %p455_p11 = pneg %p648_p10 }
  0x1a   : > { %p454_p2 = scmp.ne.s32.totalorder %s452_s17, %s453_s18  ;;  %s458_s23 = scalar_lea.hbm %s720_s1, 16 }
  0x1b   : > { %p459_p0 = scmp.lt.s32.totalorder %s452_s17, %s720_s1  ;;  %p460_p5 = scmp.lt.s32.totalorder %s458_s23, %s453_s18 }
  0x1c   : > { %p456_p12 = pnand %p455_p11, %p454_p2 }
  0x1d   : > { %p461_p7 = por %p460_p5, %p459_p0 }
  0x1e   : > { %p457_p13 = pneg %p456_p12 }
  0x20   : > { %p462_p9 = pnand %p461_p7, %p457_p13 }
  0x22   : > { %465 = shalt.err (!%p462_p9)
}
  0x23   : > { %385 = dma.hbm_to_vmem [thread:$0]  (!%p648_p10), %s132_s5, 128, %s134_s7, %s121_s14  }
  0x24   : > { %142 = sbr.rel (%p615_p8) target bundleno = 447 (0x1bf), region = 28 }
  0x29   : > { %526 = dma.done.wait (%p61_p1), [#allocation5], 16  }
  0x2a   : > { %528 = vsyncadd (%p61_p1), [#allocation5], 4294967280  ;;  %s669_s27 = sand.u32 1, %s543_s10  }
  0x2b   : > { %s358_s29 = sshll.u32 %s669_s27, 3  ;;  %s150_s30 = scalar_lea.sflag [#allocation3], %s669_s27 }
  0x2c   : > { %s675_s3 = scalar_lea.vmem [#allocation6], %s358_s29 }
  0x2d   : > { %530 = dma.done.wait (%p602_p4), %s150_s30, 128  }
  0x2e   : > { %532 = vsyncadd (%p602_p4), %s150_s30, 4294967168 }
  0x2f   : > { %159 = sfence }
  0x30   : > { %v176_v0 = vld [vmem:[%s675_s3] sm:$0xf]  ;;  %v178_v1 = vld [vmem:[%s675_s3 + $0x4] sm:$0xf]  ;;  %vm180_vm0 = vcmask 1043456   ;;  %v186_v4 = vlaneseq  ;;  %s361_s20 = sld [smem:[#allocation2 + $0x2]] }
  0x31   : > { %v179_v2 = vadd.f32 %v178_v1, %v176_v0  ;;  %s360_s4 = sld [smem:[#allocation2 + $0x1]]  ;;  %vm191_vm1 = vcmask 7168   ;;  %vm193_vm2 = vcmask 39936   ;;  %s554_s15 = smov 126   ;;  %v556_v37 = vmov 839922192  }
  0x32   : > { %v187_v5 = vand.u32 127, %v186_v4  ;;  %s555_s5 = smov 127   ;;  %v237_v16 = vshrl.u32 %v186_v4, 7  ;;  %s195_s6 = sld [smem:[#allocation2]]  ;;  %v244_v38 = vunpack.c.l.s4 %v556_v37  ;;  %v234_v40 = vld [vmem:[%s675_s3] sm:$0xff] }
  0x33   : > { %v181_v3 = vsel %vm180_vm0, %v179_v2, 0.0  ;;  %s369_s7 = sshll.u32 %s593_s13, 3  ;;  %s175_s18 = scalar_lea.vmem [#allocation7], %s358_s29 }
  0x34   : > { %182 = vadd.xlane.f32.xlu0 %v181_v3  ;;  %v188_v6 = vadd.s32 4294967295, %v187_v5  ;;  %430 = vset.pattern.permute.xlu1 %v237_v16  ;;  %v245_v39 = vunpack.c.0.s8 %v244_v38  ;;  %s262_s17 = scalar_lea.hbm %s721_s2, %s369_s7  ;;  %s264_s19 = sshll.u32 %s175_s18, 4  ;;  %s265_s19 = int_to_ptr.vmem [resolvable:$true] %s264_s19 }
  0x35   : > { %431 = vset.pattern.permute.xlu0 %v237_v16  ;;  %s266_s22 = sshll.u32 %s262_s17, 4  ;;  %s251_s23 = scalar_lea.sflag [#allocation4], %s669_s27  ;;  %s267_s22 = int_to_ptr.hbm [resolvable:$true] %s266_s22 }
  0x36   : > { %v208_v10 = vstv %s361_s20  ;;  %s495_s24 = sshra.s32 %s267_s22, 4  ;;  %s501_s3 = scalar_lea.hbm %s721_s2, 16  ;;  %s496_s24 = int_to_ptr.hbm [resolvable:$true] %s495_s24 }
  0x37   : > { %v200_v11 = vstv %s360_s4  ;;  %s497_s13 = scalar_lea.hbm %s496_s24, 8  ;;  %p502_p9 = scmp.lt.s32.totalorder %s496_s24, %s721_s2 }
  0x38   : > { %v196_v17 = vstv %s195_s6  ;;  %p498_p1 = scmp.ne.s32.totalorder %s496_s24, %s497_s13  ;;  %p503_p10 = scmp.lt.s32.totalorder %s501_s3, %s497_s13 }
  0x3a   : > { %p499_p4 = pnand %p498_p1, %p638_p3  ;;  %p504_p2 = por %p503_p10, %p502_p9 }
  0x3c   : > { %p500_p8 = pneg %p499_p4 }
  0x3e   : > { %p505_p11 = pnand %p504_p2, %p500_p8 }
  0xa7   : > { %v183_v7 = vpop.xlane.xlu0 %182 }
  0xa8   : > { %v184_v8 = vmul.f32 0.00390625, %v183_v7 }
  0xaa   : > { %v189_v9 = vperm.slane %v184_v8, %v188_v6 }
  0xac   : > { %v192_v12 = vsel %vm191_vm1, 0.0, %v189_v9 }
  0xad   : > { %v194_v13 = vsel %vm193_vm2, %v192_v12, 0.0 }
  0xae   : > { %v209_v14 = vmul.f32 %v208_v10, %v194_v13  ;;  %v201_v15 = vmul.f32 %v200_v11, %v194_v13  ;;  %v197_v18 = vmul.f32 %v196_v17, %v194_v13 }
  0xb0   : > { %211 = vrot.lane.b32.xlu1 %v209_v14, %s554_s15  ;;  %203 = vrot.lane.b32.xlu0 %v201_v15, %s555_s5 }
 0x122   : > { %v204_v19 = vpop.permute.xlu0 %203  ;;  %v212_v21 = vpop.permute.xlu1 %211 }
 0x123   : > { %v206_v20 = vadd.f32 %v204_v19, %v197_v18 }
 0x125   : > { %v214_v22 = vadd.f32 %v212_v21, %v206_v20 }
 0x127   : > { %v362_v23 = vmul.f32 -1.442695, %v214_v22 }
 0x129   : > { %432 = vpow2.f32 %v362_v23 }
 0x12f   : > { %v433_v24 = vpop.eup %432 }
 0x130   : > { %v218_v25 = vadd.f32 1.0, %v433_v24 }
 0x132   : > { %434 = vrcp.f32 %v218_v25  ;;  %v230_v29 = vand.u32 2147483648, %v218_v25  ;;  %v228_v31 = vand.u32 2147483647, %v218_v25  ;;  %vm224_vm4 = vweird.f32 %v218_v25 }
 0x134   : > { %v231_v33 = vor.u32 1.1754944e-38, %v230_v29  ;;  %vm229_vm6 = vcmp.eq.f32.partialorder %v228_v31, 8.507059e+37 }
 0x138   : > { %v435_v26 = vpop.eup %434 }
 0x139   : > { %v220_v27 = vmul.f32 %v435_v26, %v218_v25  ;;  %vm225_vm3 = vweird.f32 %v435_v26 }
 0x13a   : > { %vm226_vm5 = vmor %vm224_vm4, %vm225_vm3 }
 0x13b   : > { %v221_v28 = vsub.f32 1.0, %v220_v27 }
 0x13d   : > { %v222_v30 = vmul.f32 %v435_v26, %v221_v28 }
 0x13f   : > { %v223_v32 = vadd.f32 %v435_v26, %v222_v30 }
 0x141   : > { %v227_v34 = vsel %vm226_vm5, %v435_v26, %v223_v32 }
 0x142   : > { %v232_v35 = vsel %vm229_vm6, %v231_v33, %v227_v34 }
 0x143   : > { %v235_v36 = vperm.slane %v232_v35, 0 }
 0x145   : > { %240 = vperm.xlu1 %430, %v235_v36  }
 0x1b7   : > { %v241_v41 = vpop.permute.xlu1 %240 }
 0x1b8   : > { %v246_v42 = vperm.slane %v241_v41, %v245_v39 }
 0x1ba   : > { %v248_v43 = vmul.f32 %v246_v42, %v234_v40 }
 0x1bc   : > { %249 = vst [vmem:[%s175_s18] sm:$0xff] %v248_v43 }
 0x1bd   : > { %508 = shalt.err (!%p505_p11)
}
 0x1be   : > { %376 = dma.vmem_to_hbm [thread:$0]  (%p638_p3), %s265_s19, 128, %s267_s22, %s251_s23  }
 0x1bf PF: > { %s278_s27 = sand.u32 1, %s539_s9   ;;  %p727_p12 = scmp.ge.s32.totalorder %s551_s12, 2 }
 0x1c0   : > { %s279_s4 = scalar_lea.sflag [#allocation4], %s278_s27 }
 0x1c1   : > { %p387_p13 = pnand %p727_p12, %p607_p6 }
 0x1c3   : > { %p388_p0 = pneg %p387_p13 }
 0x1c5   : > { %534 = dma.done.wait (%p388_p0), %s279_s4, 128  }
 0x1c6   : > { %536 = vsyncadd (%p388_p0), %s279_s4, 4294967168  ;;  %p16_p5 = scmp.ge.s32.totalorder %s623_s21, 4   ;;  %s728_s9 = smov %s543_s10 }
 0x1c7   : > { %s729_s10 = smov %s547_s11  ;;  %s730_s11 = smov %s633_s25 }
 0x1c8   : > { %s731_s12 = smov %s623_s21  ;;  %18 = sbr.rel (!%p16_p5) target bundleno = 6 (0x6), region = 78 }
 0x1cd   :  { %285 = vsyncpa [#allocation3], 1 }
 0x1ce   :  { %287 = vsyncpa [#allocation3 + $0x1], 1 }
 0x1cf   :  { %288 = vsyncpa [#allocation4], 1 }
 0x1d0   :  { %290 = vsyncpa [#allocation4 + $0x1], 1 }
 0x1d1   :  { %291 = vsyncpa [#allocation5], 1 }
 0x1d2   :  { %293 = vsyncpa [#allocation5 + $0x1], 1 }

</bundles_post_ra>
